<compile_context>
chip_gen: v7x
topology: tpu7x:2x2x1
jax: 0.10.0
libtpu: 0.0.40
codegen_flags: <defaults>
</compile_context>

<pallas_src>
import jax
import jax.numpy as jnp
from jax.experimental import pallas as pl
from jax.experimental.pallas import tpu as pltpu


def _actor_kernel(x_ref, w1_ref, b1_ref, w2_ref, b2_ref, w3_ref, b3_ref,
                  means_ref):
    x = x_ref[...]

    # fc1 + relu
    h1 = jnp.dot(x, w1_ref[...], preferred_element_type=jnp.float32) + b1_ref[...]
    h1 = jnp.maximum(h1, 0.0)

    # fc2 + relu
    h2 = jnp.dot(h1, w2_ref[...], preferred_element_type=jnp.float32) + b2_ref[...]
    h2 = jnp.maximum(h2, 0.0)

    # fc3 -> means
    means = jnp.dot(h2, w3_ref[...], preferred_element_type=jnp.float32) + b3_ref[...]
    means_ref[...] = means.astype(means_ref.dtype)


def actor_net_forward(x, params, *, batch_block=512):
    """ActorNet forward pass.

    Returns (means, stds): the parameters of the Normal distribution that the
    torch module's forward() would construct.
    """
    w1, b1, w2, b2, w3, b3, logstds = params
    batch, state_size = x.shape
    action_size = w3.shape[1]

    # ---- stds: x-independent, computed once outside the kernel --------------
    # torch: clamp(exp(logstds), -10, 10); exp > 0 so the lower bound is dead.
    stds = jnp.minimum(jnp.exp(logstds), 10.0)

    # ---- means: the MLP, in one Pallas kernel --------------------------------
    out_shape = jax.ShapeDtypeStruct((batch, action_size), jnp.float32)

    if batch >= 2 * batch_block and batch % batch_block == 0:
        # Large-batch amortization path: tile over batch, weights stay resident
        # (constant index_maps → Pallas skips re-DMA between consecutive steps);
        # batch axis is parallel so it shards across TCs on v7x.
        means = pl.pallas_call(
            _actor_kernel,
            out_shape=out_shape,
            grid=(batch // batch_block,),
            in_specs=[
                pl.BlockSpec((batch_block, state_size), lambda i: (i, 0)),
                pl.BlockSpec(w1.shape, lambda i: (0, 0)),
                pl.BlockSpec(b1.shape, lambda i: (0, 0)),
                pl.BlockSpec(w2.shape, lambda i: (0, 0)),
                pl.BlockSpec(b2.shape, lambda i: (0, 0)),
                pl.BlockSpec(w3.shape, lambda i: (0, 0)),
                pl.BlockSpec(b3.shape, lambda i: (0, 0)),
            ],
            out_specs=pl.BlockSpec((batch_block, action_size), lambda i: (i, 0)),
            compiler_params=pltpu.CompilerParams(
                dimension_semantics=("parallel",)),
        )(x, w1, b1, w2, b2, w3, b3)
    else:
        # Small-batch path: single invocation, whole problem resident in VMEM.
        vmem = pl.BlockSpec(memory_space=pltpu.MemorySpace.VMEM)
        means = pl.pallas_call(
            _actor_kernel,
            out_shape=out_shape,
            in_specs=[vmem] * 7,
            out_specs=vmem,
        )(x, w1, b1, w2, b2, w3, b3)

    return means, jnp.broadcast_to(stds, means.shape)


def init_actor_params(key, state_size, action_size, hidden_layer):
    """Deterministic init mimicking torch.nn.Linear's U(-1/sqrt(fan_in), ..).

    Weights are stored (in, out); biases / logstds are (1, dim)."""
    def linear(key, fan_in, fan_out):
        kw, kb = jax.random.split(key)
        bound = 1.0 / jnp.sqrt(float(fan_in))
        w = jax.random.uniform(kw, (fan_in, fan_out), jnp.float32, -bound, bound)
        b = jax.random.uniform(kb, (1, fan_out), jnp.float32, -bound, bound)
        return w, b

    k1, k2, k3 = jax.random.split(key, 3)
    w1, b1 = linear(k1, state_size, hidden_layer)
    w2, b2 = linear(k2, hidden_layer, hidden_layer // 2)
    w3, b3 = linear(k3, hidden_layer // 2, action_size)
    # torch: nn.Parameter(th.full((action_size,), 0.1))
    logstds = jnp.full((1, action_size), 0.1, dtype=jnp.float32)
    return (w1, b1, w2, b2, w3, b3, logstds)


def _reference_forward(x, params):
    """Pure-JAX reference for correctness checking."""
    w1, b1, w2, b2, w3, b3, logstds = params
    h1 = jnp.maximum(x @ w1 + b1, 0.0)
    h2 = jnp.maximum(h1 @ w2 + b2, 0.0)
    means = h2 @ w3 + b3
    stds = jnp.clip(jnp.exp(logstds), -10.0, 10.0)
    return means, jnp.broadcast_to(stds, means.shape)


if __name__ == "__main__":
    # Shapes consistent with LunarLander-v2 continuous:
    # state_size=8, action_size=2, hidden_layer=32.
    state_size, action_size, hidden_layer = 8, 2, 32

    key = jax.random.PRNGKey(0)
    kparams, kx_small, kx_big = jax.random.split(key, 3)
    params = init_actor_params(kparams, state_size, action_size, hidden_layer)

    # --- small-batch path (single full-array VMEM block) ---
    batch = 8
    x = jax.random.normal(kx_small, (batch, state_size), dtype=jnp.float32)
    means, stds = jax.block_until_ready(actor_net_forward(x, params))
    ref_means, ref_stds = _reference_forward(x, params)
    assert means.shape == (batch, action_size)
    assert stds.shape == (batch, action_size)
    assert jnp.allclose(means, ref_means, atol=1e-5, rtol=1e-5)
    assert jnp.allclose(stds, ref_stds, atol=1e-6, rtol=1e-6)

    # --- large-batch amortization path (parallel grid over batch tiles) ---
    big_batch = 2048
    xb = jax.random.normal(kx_big, (big_batch, state_size), dtype=jnp.float32)
    means_b, stds_b = jax.block_until_ready(actor_net_forward(xb, params))
    ref_means_b, ref_stds_b = _reference_forward(xb, params)
    assert means_b.shape == (big_batch, action_size)
    assert stds_b.shape == (big_batch, action_size)
    assert jnp.allclose(means_b, ref_means_b, atol=1e-5, rtol=1e-5)
    assert jnp.allclose(stds_b, ref_stds_b, atol=1e-6, rtol=1e-6)

    # TODO(synk): th.distributions.Normal has no Pallas equivalent; the kernel
    # returns the distribution's (means, stds) parameters instead.
    print("KERNEL_OK")
</pallas_src>

<mosaic_0001>
module attributes {stable_mosaic.version = 11 : i64} {
  func.func @_actor_kernel(%arg0: memref<8x8xf32, #tpu.memory_space<vmem>>, %arg1: memref<8x32xf32, #tpu.memory_space<vmem>>, %arg2: memref<1x32xf32, #tpu.memory_space<vmem>>, %arg3: memref<32x16xf32, #tpu.memory_space<vmem>>, %arg4: memref<1x16xf32, #tpu.memory_space<vmem>>, %arg5: memref<16x2xf32, #tpu.memory_space<vmem>>, %arg6: memref<1x2xf32, #tpu.memory_space<vmem>>, %arg7: memref<8x2xf32, #tpu.memory_space<vmem>>) attributes {dimension_semantics = [], scalar_prefetch = 0 : i64, scratch_operands = 0 : i64, tpu.core_type = #tpu.core_type<tc>} {
    %c0 = arith.constant 0 : index
    %c0_0 = arith.constant 0 : index
    %0 = vector.load %arg0[%c0, %c0_0] : memref<8x8xf32, #tpu.memory_space<vmem>>, vector<8x8xf32>
    %c0_1 = arith.constant 0 : index
    %c0_2 = arith.constant 0 : index
    %1 = vector.load %arg1[%c0_1, %c0_2] : memref<8x32xf32, #tpu.memory_space<vmem>>, vector<8x32xf32>
    %cst = arith.constant dense<0.000000e+00> : vector<8x32xf32>
    %2 = tpu.matmul %0, %1, %cst {dimension_numbers = #tpu.dot_dimension_numbers<[1], [0], [0], [1], [0, 0, 1, 1], [], []>} : vector<8x8xf32>, vector<8x32xf32>, vector<8x32xf32> -> vector<8x32xf32>
    %c0_3 = arith.constant 0 : index
    %c0_4 = arith.constant 0 : index
    %3 = vector.load %arg2[%c0_3, %c0_4] : memref<1x32xf32, #tpu.memory_space<vmem>>, vector<1x32xf32>
    %4 = vector.broadcast %3 : vector<1x32xf32> to vector<8x32xf32>
    %5 = arith.addf %2, %4 : vector<8x32xf32>
    %cst_5 = arith.constant 0.000000e+00 : f32
    %6 = vector.broadcast %cst_5 : f32 to vector<8x32xf32>
    %7 = arith.maximumf %5, %6 : vector<8x32xf32>
    %c0_6 = arith.constant 0 : index
    %c0_7 = arith.constant 0 : index
    %8 = vector.load %arg3[%c0_6, %c0_7] : memref<32x16xf32, #tpu.memory_space<vmem>>, vector<32x16xf32>
    %cst_8 = arith.constant dense<0.000000e+00> : vector<8x16xf32>
    %9 = tpu.matmul %7, %8, %cst_8 {dimension_numbers = #tpu.dot_dimension_numbers<[1], [0], [0], [1], [0, 0, 1, 1], [], []>} : vector<8x32xf32>, vector<32x16xf32>, vector<8x16xf32> -> vector<8x16xf32>
    %c0_9 = arith.constant 0 : index
    %c0_10 = arith.constant 0 : index
    %10 = vector.load %arg4[%c0_9, %c0_10] : memref<1x16xf32, #tpu.memory_space<vmem>>, vector<1x16xf32>
    %11 = vector.broadcast %10 : vector<1x16xf32> to vector<8x16xf32>
    %12 = arith.addf %9, %11 : vector<8x16xf32>
    %cst_11 = arith.constant 0.000000e+00 : f32
    %13 = vector.broadcast %cst_11 : f32 to vector<8x16xf32>
    %14 = arith.maximumf %12, %13 : vector<8x16xf32>
    %c0_12 = arith.constant 0 : index
    %c0_13 = arith.constant 0 : index
    %15 = vector.load %arg5[%c0_12, %c0_13] : memref<16x2xf32, #tpu.memory_space<vmem>>, vector<16x2xf32>
    %cst_14 = arith.constant dense<0.000000e+00> : vector<8x2xf32>
    %16 = tpu.matmul %14, %15, %cst_14 {dimension_numbers = #tpu.dot_dimension_numbers<[1], [0], [0], [1], [0, 0, 1, 1], [], []>} : vector<8x16xf32>, vector<16x2xf32>, vector<8x2xf32> -> vector<8x2xf32>
    %c0_15 = arith.constant 0 : index
    %c0_16 = arith.constant 0 : index
    %17 = vector.load %arg6[%c0_15, %c0_16] : memref<1x2xf32, #tpu.memory_space<vmem>>, vector<1x2xf32>
    %18 = vector.broadcast %17 : vector<1x2xf32> to vector<8x2xf32>
    %19 = arith.addf %16, %18 : vector<8x2xf32>
    %c0_17 = arith.constant 0 : index
    %c0_18 = arith.constant 0 : index
    %20 = vector.load %arg7[%c0_17, %c0_18] : memref<8x2xf32, #tpu.memory_space<vmem>>, vector<8x2xf32>
    tpu.vector_store %arg7[%c0_17, %c0_18], %19 {strides = array<i32>} : memref<8x2xf32, #tpu.memory_space<vmem>>, vector<8x2xf32>,
    return
  }
}

</mosaic_0001>

<bundles_post_ra>
// kernel: tpu_custom_call.1
= control target key start
LH: loop header
LB: loop body
LE: loop exit
PB: predicated region body
PF: predicated region fallthrough
CT: control target
= control target key end

     0   :  { %vm35_vm0 = vcmask 64512   ;;  %v336_v0 = vmov 0.0   ;;  %vm337_vm1 = vmmov 0   ;;  %v338_v4 = vmov 0.0|0.0   ;;  %s415_s1 = inlined_call_operand.vmem [shape: f32[8,32], index: 1, kind: input, shape index: {}]   ;;  %s416_s0 = inlined_call_operand.vmem [shape: f32[8,8], index: 0, kind: input, shape index: {}]   ;;  %s417_s3 = inlined_call_operand.vmem [shape: f32[32,16], index: 3, kind: input, shape index: {}]   ;;  %s418_s2 = inlined_call_operand.vmem [shape: f32[1,32], index: 2, kind: input, shape index: {}]   ;;  %s419_s5 = inlined_call_operand.vmem [shape: f32[16,2], index: 5, kind: input, shape index: {}]   ;;  %s420_s4 = inlined_call_operand.vmem [shape: f32[1,16], index: 4, kind: input, shape index: {}]   ;;  %s421_s6 = inlined_call_operand.vmem [shape: f32[1,2], index: 6, kind: input, shape index: {}]   ;;  %s422_s7 = inlined_call_operand.vmem [shape: f32[8,2], index: 7, kind: output, shape index: {}]  }
   0x1   :  { %301 = vmatprep.subr.mxu0 %v336_v0  ;;  %v27_v1 = vld [vmem:[%s415_s1] sm:$0xff]  ;;  %303 = vmatprep.mubr.msk.f32.mxu0 %vm337_vm1, %v336_v0  ;;  %v111_v5 = vld [vmem:[%s417_s3 + $0x8] sm:$0xff]  ;;  %v112_v7 = vld [vmem:[%s417_s3 + $0x10] sm:$0xff]  ;;  %vm121_vm2 = vcmask 261120   ;;  %vm205_vm3 = vcmask 130048   ;;  %vm279_vm4 = vcmask 15360  }
   0x2   :  { %v26_v2 = vld [vmem:[%s416_s0] sm:$0xff]  ;;  %302 = vmatpush3.msra.mxu0 %v27_v1  ;;  %324 = vmatprep.subr.bf16.mxu1 %v338_v4  ;;  %v113_v8 = vld [vmem:[%s417_s3 + $0x18] sm:$0xff]  ;;  %v197_v16 = vld [vmem:[%s419_s5 + $0x8] sm:$0xff] }
   0x3   :  { %v110_v3 = vld [vmem:[%s417_s3] sm:$0xff]  ;;  %304 = vmatmul.mubr.msk.f32.vlgmr.msra.gmra.mrb[0].mxu0 %vm35_vm0, %v26_v2  ;;  %314 = vmatprep.mubr.msk.f32.mxu1 %vm337_vm1, %v336_v0  ;;  %v328_v9 = vpack.c.bf16 %v113_v8, %v112_v7 }
   0x4   :  { %v325_v6 = vpack.c.bf16 %v111_v5, %v110_v3  ;;  %330 = vmatprep.subr.bf16.mxu0 %v338_v4  ;;  %321 = vmatprep.mubr.msk.f32.mxu0 %vm337_vm1, %v336_v0  ;;  %v285_v10 = vld [vmem:[%s418_s2] ss:$0 sm:$0xff] }
   0x5   :  { %v196_v15 = vld [vmem:[%s419_s5] sm:$0xff] }
   0x6   :  { %326 = vmatpush3.bf16.msra.mxu1 %v325_v6  ;;  %v331_v17 = vpack.c.bf16 %v197_v16, %v196_v15  ;;  %v287_v18 = vld [vmem:[%s420_s4] ss:$0 sm:$0xff] }
   0x7   :  { %327 = vmatprep.subr.bf16.mxu1 %v338_v4  ;;  %v289_v23 = vld [vmem:[%s421_s6] ss:$0 sm:$0xff] }
   0x8   :  { %332 = vmatpush3.bf16.msra.mxu0 %v331_v17 }
   0xa   :  { %329 = vmatpush3.bf16.msra.mxu1 %v328_v9 }
  0xd6   :  { %v105_v11 = vpop.f32.mrb[0].mxu0 }
  0xd7   :  { %v106_v12 = vadd.f32 %v285_v10, %v105_v11  ;;  %v305_v13 = vpop.f32.mrb[1].mxu0 }
  0xd9   :  { %v109_v14 = vmax.f32 %v106_v12, 0.0 }
  0xdb   :  { %315 = vmatmul.mubr.msk.f32.vlgmr.msra.gmra.mrb[0].mxu1 %vm121_vm2, %v109_v14 }
 0x1ae   :  { %v191_v19 = vpop.f32.mrb[0].mxu1 }
 0x1af   :  { %v192_v20 = vadd.f32 %v287_v18, %v191_v19  ;;  %v316_v21 = vpop.f32.mrb[1].mxu1 }
 0x1b1   :  { %v195_v22 = vmax.f32 %v192_v20, 0.0 }
 0x1b3   :  { %322 = vmatmul.mubr.msk.f32.vlgmr.msra.gmra.mrb[2].mxu0 %vm205_vm3, %v195_v22 }
 0x286   :  { %v275_v24 = vpop.f32.mrb[2].mxu0 }
 0x287   :  { %v276_v25 = vadd.f32 %v289_v23, %v275_v24  ;;  %v323_v26 = vpop.f32.mrb[3].mxu0 }
 0x289   :  { %280 = vst.msk [vmem:[%s422_s7] sm:$0xff] %vm279_vm4, %v276_v25 }

</bundles_post_ra>
